<compile_context>
chip_gen: v5e
topology: v5e:2x2
jax: 0.10.0
libtpu: 0.0.40
codegen_flags: <defaults>
</compile_context>

<pallas_src>
import functools

import jax
import jax.numpy as jnp
from jax.experimental import pallas as pl
from jax.experimental.pallas import tpu as pltpu


# ------------------------------------------------------------------ kernel ---

def _fade_resblock_kernel(
    x_ref, feat_ref,                 # (1, C, H*W) f32 activations (one sample)
    wmod_ref, bmod_ref,              # fused FADE gamma/beta conv: (6C, 9C) bf16, (6C, 1) f32
    w0_ref, b0_ref,                  # conv_0: (C, 9C) bf16, (C, 1) f32
    w1_ref, b1_ref,                  # conv_1: (fout, 9C) bf16, (fout, 1) f32
    ws_ref,                          # conv_s (1x1, no bias): (fout, C) bf16
    out_ref,                         # (1, fout, H*W)
    *, width, roll_sign,
):
    c = x_ref.shape[1]
    hw = x_ref.shape[2]

    x = x_ref[0]          # (C, HW) f32
    feat = feat_ref[0]    # (C, HW) f32

    # ---- circular-shift helpers on the flat (y*W + x) lane axis -------------
    # _shift(v, d): out[..., l] = v[..., (l + d) % HW].  pltpu.roll's rotation
    # direction (jnp.roll convention) is probed once at setup; roll_sign flips
    # the shift if the backend ever used the opposite convention.
    def _shift(v, d):
        s = (-roll_sign * d) % hw
        if s == 0:
            return v
        return pltpu.roll(v, s, axis=1)

    # x-coordinate (column within a row of `width`) of each lane — hoisted once.
    col = jax.lax.broadcasted_iota(jnp.int32, (c, hw), 1) % width
    first_col = col == 0
    last_col = col == width - 1

    def conv3x3_circular(a, w_r, b_r):
        # Periodic 3x3 conv as one im2col matmul (K = 9*C), lane-dense result.
        # Column (dx) shifts: flat roll + boundary fix-up; row (dy) shifts are
        # exact flat rolls by dy*width.
        xm = jnp.where(first_col, _shift(a, width - 1), _shift(a, -1))   # dx=-1
        xp = jnp.where(last_col, _shift(a, 1 - width), _shift(a, 1))     # dx=+1
        cols = (xm, a, xp)                                               # dx=-1,0,+1
        taps = []
        for dy in (-1, 0, 1):                                            # ky-major
            for base in cols:                                            # then kx
                taps.append(_shift(base, dy * width) if dy else base)
        patches = jnp.concatenate(taps, axis=0).astype(jnp.bfloat16)     # (9C, HW)
        acc = jnp.dot(w_r[...], patches, preferred_element_type=jnp.float32)
        return acc + b_r[...]                                            # (Co, HW) f32

    def instance_norm(a):
        # per-(sample, channel) stats over H*W; biased variance, eps = 1e-5.
        mean = jnp.mean(a, axis=1, keepdims=True)
        d = a - mean
        var = jnp.mean(d * d, axis=1, keepdims=True)
        return d * jax.lax.rsqrt(var + 1e-5)

    def leaky_relu(a):
        return jnp.where(a > 0, a, 0.2 * a)

    # ---- all six FADE gamma/beta maps from ONE fused conv over `feat` -------
    mod = conv3x3_circular(feat, wmod_ref, bmod_ref)        # (6C, HW) f32
    g0, be0 = mod[0 * c:1 * c], mod[1 * c:2 * c]
    g1, be1 = mod[2 * c:3 * c], mod[3 * c:4 * c]
    gs, bes = mod[4 * c:5 * c], mod[5 * c:6 * c]

    # norm_0 and norm_s share the same parameter-free InstanceNorm(x).
    x_n = instance_norm(x)

    # ---- learned shortcut: conv_s(norm_s(x, feat)); 1x1, no bias, no actvn --
    xs = x_n * (1.0 + gs) + bes
    x_s = jnp.dot(ws_ref[...], xs.astype(jnp.bfloat16),
                  preferred_element_type=jnp.float32)       # (fout, HW)

    # ---- main branch ---------------------------------------------------------
    h0 = leaky_relu(x_n * (1.0 + g0) + be0)
    d0 = conv3x3_circular(h0, w0_ref, b0_ref)               # (C, HW)
    h1 = leaky_relu(instance_norm(d0) * (1.0 + g1) + be1)
    d1 = conv3x3_circular(h1, w1_ref, b1_ref)               # (fout, HW)

    out_ref[0] = (x_s + d1).astype(out_ref.dtype)


# ------------------------------------------------- roll-convention probe -----

_ROLL_SIGN = None


def _probe_roll_sign():
    """One-time tiny kernel: +1 if pltpu.roll matches jnp.roll semantics
    (out[i] = in[(i - shift) % n]), -1 otherwise.  Guarantees the circular-pad
    shifts in the main kernel are direction-correct regardless of convention."""
    def k(x_r, o_r):
        o_r[...] = pltpu.roll(x_r[...], 1, axis=1)

    x = jnp.arange(8 * 128, dtype=jnp.int32).reshape(8, 128) % 128
    y = pl.pallas_call(
        k,
        out_shape=jax.ShapeDtypeStruct((8, 128), jnp.int32),
        in_specs=[pl.BlockSpec(memory_space=pltpu.MemorySpace.VMEM)],
        out_specs=pl.BlockSpec(memory_space=pltpu.MemorySpace.VMEM),
    )(x)
    return -1 if int(y[0, 0]) == 1 else 1


def _roll_sign():
    global _ROLL_SIGN
    if _ROLL_SIGN is None:           # NOTE: one-time probe, must run outside jit
        _ROLL_SIGN = _probe_roll_sign()
    return _ROLL_SIGN


# ----------------------------------------------------------------- wrapper ---

def _conv_matrix(w_oihw):
    # PyTorch (Co, Ci, kh, kw) -> (Co, kh*kw*Ci); contraction index = (tap, ci)
    # with tap = ky*3 + kx, matching the in-kernel im2col ordering.  bf16 for MXU.
    co, ci, kh, kw = w_oihw.shape
    return jnp.transpose(w_oihw, (0, 2, 3, 1)).reshape(co, kh * kw * ci).astype(jnp.bfloat16)


def fade_resnet_block_periodic(x_nchw, feat_nchw, params):
    """x: (N, fin, H, W), feat: (N, fin, H, W) -> (N, fout, H, W).  Native NCHW
    in/out; the kernel computes on (C, H*W) slabs with H*W on the lane axis."""
    n, fin, h, w = x_nchw.shape
    hw = h * w
    fout = params["w1"].shape[0]

    # ---- plain-JAX parameter plumbing (free at setup) ------------------------
    # All six FADE gamma/beta convs read the same `feat`: fuse along Co.
    wmod = jnp.concatenate([_conv_matrix(params[k]) for k in
                            ("g0w", "be0w", "g1w", "be1w", "gsw", "besw")], axis=0)
    bmod = jnp.concatenate([params[k] for k in
                            ("g0b", "be0b", "g1b", "be1b", "gsb", "besb")]).reshape(-1, 1)
    w0 = _conv_matrix(params["w0"]); b0 = params["b0"].reshape(-1, 1)
    w1 = _conv_matrix(params["w1"]); b1 = params["b1"].reshape(-1, 1)
    ws = params["ws"].reshape(fout, fin).astype(jnp.bfloat16)   # 1x1 conv -> (fout, fin)

    # ---- lane-dense layout: flatten spatial (H*W) onto the 128-lane axis -----
    x2 = x_nchw.reshape(n, fin, hw)
    f2 = feat_nchw.reshape(n, fin, hw)

    kernel = functools.partial(_fade_resblock_kernel, width=w, roll_sign=_roll_sign())

    def _const(a):  # full-array block, same for every grid step
        zero = (0,) * a.ndim
        return pl.BlockSpec(a.shape, lambda i, _z=zero: _z)

    out = pl.pallas_call(
        kernel,
        grid=(n,),                                  # one sample per grid step
        out_shape=jax.ShapeDtypeStruct((n, fout, hw), x_nchw.dtype),
        in_specs=[
            pl.BlockSpec((1, fin, hw), lambda i: (i, 0, 0)),
            pl.BlockSpec((1, fin, hw), lambda i: (i, 0, 0)),
            _const(wmod), _const(bmod),
            _const(w0), _const(b0),
            _const(w1), _const(b1),
            _const(ws),
        ],
        out_specs=pl.BlockSpec((1, fout, hw), lambda i: (i, 0, 0)),
        compiler_params=pltpu.CompilerParams(
            dimension_semantics=("parallel",),      # megacore / v7x: samples in parallel
            vmem_limit_bytes=32 * 1024 * 1024,      # explicit headroom (<1 MiB used)
        ),
    )(x2, f2, wmod, bmod, w0, b0, w1, b1, ws)
    return out.reshape(n, fout, h, w)               # contiguous split -> NCHW, no transpose


# -------------------------------------------------------- parameter set-up ---

def _conv_weight(key, cout, cin, k):
    fan_in = cin * k * k
    return jax.random.normal(key, (cout, cin, k, k), jnp.float32) / jnp.sqrt(fan_in)


def _bias(key, cout):
    return jax.random.normal(key, (cout,), jnp.float32) * 0.05


def _spectral_normalize(w_oihw, n_iter=10):
    # W / sigma with sigma from power iteration on W reshaped to (out, -1),
    # mirroring torch.nn.utils.parametrizations.spectral_norm's forward.
    co = w_oihw.shape[0]
    wmat = w_oihw.reshape(co, -1)
    u = jnp.full((co,), 1.0 / jnp.sqrt(co), jnp.float32)
    v = None
    for _ in range(n_iter):
        v = wmat.T @ u
        v = v / (jnp.linalg.norm(v) + 1e-12)
        u = wmat @ v
        u = u / (jnp.linalg.norm(u) + 1e-12)
    sigma = u @ (wmat @ v)
    return w_oihw / sigma


def init_params(key, fin, fout):
    """Parameters in native PyTorch layouts: conv weights (Co,Ci,kh,kw), biases (Co,)."""
    assert fin != fout, "this synthetic config exercises the learned shortcut"
    fmid = fin
    ks = jax.random.split(key, 17)
    p = {}
    # FADE norm_0 (norm_nc=fin, feature_nc=fin)
    p["g0w"] = _conv_weight(ks[0], fin, fin, 3);    p["g0b"] = _bias(ks[1], fin)
    p["be0w"] = _conv_weight(ks[2], fin, fin, 3);   p["be0b"] = _bias(ks[3], fin)
    # FADE norm_1 (norm_nc=fmid, feature_nc=fmid)
    p["g1w"] = _conv_weight(ks[4], fmid, fmid, 3);  p["g1b"] = _bias(ks[5], fmid)
    p["be1w"] = _conv_weight(ks[6], fmid, fmid, 3); p["be1b"] = _bias(ks[7], fmid)
    # FADE norm_s (norm_nc=fin, feature_nc=fin)
    p["gsw"] = _conv_weight(ks[8], fin, fin, 3);    p["gsb"] = _bias(ks[9], fin)
    p["besw"] = _conv_weight(ks[10], fin, fin, 3);  p["besb"] = _bias(ks[11], fin)
    # conv_0 / conv_1 / conv_s : spectrally normalized
    p["w0"] = _spectral_normalize(_conv_weight(ks[12], fmid, fin, 3)); p["b0"] = _bias(ks[13], fmid)
    p["w1"] = _spectral_normalize(_conv_weight(ks[14], fout, fmid, 3)); p["b1"] = _bias(ks[15], fout)
    p["ws"] = _spectral_normalize(_conv_weight(ks[16], fout, fin, 1))   # (fout, fin, 1, 1)
    return p


# -------------------------------------------------------------------- main ---

if __name__ == "__main__":
    key = jax.random.PRNGKey(0)
    fin, fout = 4, 8
    N, H, W = 2, 16, 16

    kx, kf, kp = jax.random.split(key, 3)
    x = jax.random.normal(kx, (N, fin, H, W), jnp.float32)      # NCHW, like PyTorch
    feat = jax.random.normal(kf, (N, fin, H, W), jnp.float32)   # guidance features
    params = init_params(kp, fin, fout)

    out = fade_resnet_block_periodic(x, feat, params)
    out = jax.block_until_ready(out)
    assert out.shape == (N, fout, H, W) and out.dtype == jnp.float32
    print("KERNEL_OK")
</pallas_src>

<mosaic_0001>
module attributes {stable_mosaic.version = 11 : i64} {
  func.func @k(%arg0: memref<8x128xi32, #tpu.memory_space<vmem>>, %arg1: memref<8x128xi32, #tpu.memory_space<vmem>>) attributes {dimension_semantics = [], scalar_prefetch = 0 : i64, scratch_operands = 0 : i64, tpu.core_type = #tpu.core_type<tc>} {
    %c0 = arith.constant 0 : index
    %c0_0 = arith.constant 0 : index
    %0 = vector.load %arg0[%c0, %c0_0] : memref<8x128xi32, #tpu.memory_space<vmem>>, vector<8x128xi32>
    %c1_i32 = arith.constant 1 : i32
    %1 = tpu.dynamic_rotate %0 by %c1_i32 dim 1 : vector<8x128xi32>, i32 -> vector<8x128xi32>
    %c0_1 = arith.constant 0 : index
    %c0_2 = arith.constant 0 : index
    %2 = vector.load %arg1[%c0_1, %c0_2] : memref<8x128xi32, #tpu.memory_space<vmem>>, vector<8x128xi32>
    tpu.vector_store %arg1[%c0_1, %c0_2], %1 {strides = array<i32>} : memref<8x128xi32, #tpu.memory_space<vmem>>, vector<8x128xi32>,
    return
  }
}

</mosaic_0001>

<bundles_post_ra>
// kernel: tpu_custom_call.1
= control target key start
LH: loop header
LB: loop body
LE: loop exit
PB: predicated region body
PF: predicated region fallthrough
CT: control target
= control target key end

     0   :  { %6 = vsyncpa [#allocation3], 0  ;;  %s118_s0 = inlined_call_operand.hbm [shape: s32[8,128], index: 0, kind: input, shape index: {}]   ;;  %s119_s1 = inlined_call_operand.hbm [shape: s32[8,128], index: 1, kind: output, shape index: {}]  }
   0x1   :  { %7 = vsyncpa [#allocation4], 0  ;;  %s13_s8 = sshll.u32 %s118_s0, 4  ;;  %s99_s9 = smov [#allocation2]   ;;  %s14_s8 = int_to_ptr.hbm [resolvable:$true] %s13_s8 }
   0x2   :  { %s15_s10 = sshll.u32 %s99_s9, 4  ;;  %s16_s10 = int_to_ptr.vmem [resolvable:$true] %s15_s10 }
   0x3   :  { %18 = dma.hbm_to_vmem [thread:$0]  %s14_s8, 128, %s16_s10, [#allocation3]  }
   0x4   :  { %95 = dma.done.wait [#allocation3], 128  }
   0x5   :  { %96 = vsyncadd [#allocation3], 4294967168  ;;  %v23_v0 = vld [vmem:[#allocation2] sm:$0xff]  ;;  %s100_s11 = smov 1   ;;  %s101_s12 = smov [#allocation5]  }
   0x6   :  { %24 = vrot.lane.b32.xlu0 %v23_v0, %s100_s11  ;;  %s32_s13 = sshll.u32 %s101_s12, 4  ;;  %s34_s16 = sshll.u32 %s119_s1, 4  ;;  %s33_s13 = int_to_ptr.vmem [resolvable:$true] %s32_s13  ;;  %s35_s16 = int_to_ptr.hbm [resolvable:$true] %s34_s16 }
  0x78   :  { %v25_v1 = vpop.permute.xlu0 %24 }
  0x79   :  { %26 = vst [vmem:[#allocation5] sm:$0xff] %v25_v1 }
  0x7a   :  { %37 = dma.vmem_to_hbm [thread:$0]  %s33_s13, 128, %s35_s16, [#allocation4]  }
  0x7b   :  { %97 = dma.done.wait [#allocation4], 128  }
  0x7c   :  { %98 = vsyncadd [#allocation4], 4294967168 }
  0x7d   :  { %42 = vsyncpa [#allocation3], 1 }
  0x7e   :  { %43 = vsyncpa [#allocation4], 1 }

</bundles_post_ra>
